<compile_context>
chip_gen: v7x
topology: tpu7x:2x2x1
jax: 0.10.0
libtpu: 0.0.40
codegen_flags: <defaults>
</compile_context>

<pallas_src>
import functools

import jax
import jax.numpy as jnp
from jax import lax
from jax.experimental import pallas as pl
from jax.experimental.pallas import tpu as pltpu


def _round_up(x, m):
    return (x + m - 1) // m * m


def _vmem_capacity_bytes():
    try:
        return int(pltpu.get_tpu_info().vmem_capacity_bytes)
    except Exception:
        return 64 << 20  # conservative default: v7x has 64 MiB per TensorCore


def _vmem_need_bytes(rt, p, w_tile, w2p, c1, c2, taps, out_bytes):
    """Resident-VMEM estimate for one grid step (counts everything, per review)."""
    in_blk = (rt + 2 * p) * w2p * c1 * 2          # bf16 halo tile block
    in_f32 = (rt + 2 * p) * w2p * c1 * 4          # in-kernel f32 upcast of the tile
    out_blk = rt * w_tile * c2 * out_bytes        # output block
    acc_f32 = rt * w_tile * c2 * 4                # f32 accumulator
    wgt = taps * c1 * c2 * 4 + 2 * c2 * 4         # weights + scale + bias
    # double-buffered input/output/weight blocks + f32 tile copy + accumulator + slack
    # for per-tap slice temporaries.
    return 2 * in_blk + 2 * out_blk + 2 * wgt + in_f32 + acc_f32 + in_f32


def _pick_row_tile(n, h, p, w_tile, w2p, c1, c2, taps, out_bytes, budget):
    divisors = [d for d in range(1, h + 1) if h % d == 0]
    fitting = [d for d in divisors
               if _vmem_need_bytes(d, p, w_tile, w2p, c1, c2, taps, out_bytes) <= budget]
    if not fitting:
        # TODO(synk): tile C2 / the contraction instead of shrinking rows this far.
        return 1
    if n == 1:
        # v7x megacore: keep >= 2 parallel grid points when there is only one image.
        two = [d for d in fitting if h // d >= 2]
        if two:
            return max(two)
    return max(fitting)


def conv_bn_silu(x_nchw, weight, bn_gamma, bn_beta, bn_mean, bn_var, *,
                 eps=1e-5, k=3, pad=None, stride=1, groups=1, dilation=1,
                 row_tile=None, out_dtype=jnp.float32):
    """Pallas TPU implementation of ultralytics Conv.forward (eval-mode BatchNorm).

    x_nchw: (N, C1, H, W) f32;  weight: (C2, C1, k, k) f32 (bias=False);  bn_*: (C2,) f32.
    Returns (N, C2, H, W) in `out_dtype` (f32 default, matching the PyTorch module).
    """
    if stride != 1 or groups != 1 or dilation != 1:
        raise NotImplementedError("conv_bn_silu supports only stride=1, groups=1, dilation=1")
    if pad is None:
        pad = k // 2  # autopad for odd k, d=1
    assert k % 2 == 1 and pad == k // 2, "only 'same' padding with odd k is supported"

    n, c1, h, w = x_nchw.shape
    c2 = weight.shape[0]
    assert weight.shape == (c2, c1, k, k)
    kk = k
    taps = kk * kk
    out_bytes = jnp.dtype(out_dtype).itemsize

    # Tile width padded to a multiple of 8 so the in-kernel (rt, Wt, C1) -> (rt*Wt, C1)
    # collapse of the f32 patch is a pure re-labelling of sublane tiles.
    w_tile = _round_up(w, 8)
    w2p = w_tile + 2 * pad

    # ---- VMEM budget (input + output double buffers + weights + slack) & row tiling ----
    cap = _vmem_capacity_bytes()
    budget = min(int(0.7 * cap), 48 << 20)
    if row_tile is None:
        row_tile = _pick_row_tile(n, h, pad, w_tile, w2p, c1, c2, taps, out_bytes, budget)
    assert h % row_tile == 0, "row_tile must divide H"
    rt = row_tile
    t_tiles = h // rt
    need = _vmem_need_bytes(rt, pad, w_tile, w2p, c1, c2, taps, out_bytes)
    vmem_limit = int(min(max(2 * need, 32 << 20), cap * 7 // 8))

    # ---- wrapper prep: NCHW->NHWC, bf16 cast BEFORE padding, spatial pad, overlapping
    #      halo row slabs (one ~1.1x bf16 pass over the input; no KH*KW im2col). ----
    x_nhwc = jnp.transpose(x_nchw, (0, 2, 3, 1)).astype(jnp.bfloat16)
    x_padded = jnp.pad(x_nhwc, ((0, 0), (pad, pad), (pad, pad + (w_tile - w)), (0, 0)))
    x_tiles = jnp.stack(
        [x_padded[:, t * rt: t * rt + rt + 2 * pad] for t in range(t_tiles)], axis=1)
    # x_tiles: (N, T, rt + 2*pad, w_tile + 2*pad, C1) bf16

    # ---- weights stay f32 (tiny); BN is an f32 affine applied in the kernel epilogue ----
    w_taps = jnp.transpose(weight, (2, 3, 1, 0)).reshape(taps, c1, c2).astype(jnp.float32)
    scale = (bn_gamma / jnp.sqrt(bn_var + eps)).astype(jnp.float32).reshape(1, c2)
    bias = (bn_beta - bn_mean * scale[0]).astype(jnp.float32).reshape(1, c2)

    def kernel(x_ref, w_ref, s_ref, b_ref, o_ref):
        # x_ref: (rt+2p, w_tile+2p, C1) bf16 halo tile (leading N/T dims squeezed)
        # w_ref: (taps, C1, C2) f32;  s_ref/b_ref: (1, C2) f32;  o_ref: (rt*w_tile, C2)
        xt = x_ref[...].astype(jnp.float32)          # aligned bf16 load, f32 upcast once
        acc = jnp.zeros((rt * w_tile, c2), jnp.float32)
        for i in range(kk):                          # KH*KW accumulating MXU matmuls
            for j in range(kk):
                patch = xt[i:i + rt, j:j + w_tile, :].reshape(rt * w_tile, c1)
                acc = acc + jnp.dot(patch, w_ref[i * kk + j],
                                    preferred_element_type=jnp.float32)
        y = acc * s_ref[...] + b_ref[...]            # f32 BatchNorm affine (VPU)
        o_ref[...] = (y * jax.nn.sigmoid(y)).astype(o_ref.dtype)   # SiLU (EUP) + store

    cost = pl.CostEstimate(
        flops=2 * n * t_tiles * rt * w_tile * taps * c1 * c2,
        transcendentals=n * t_tiles * rt * w_tile * c2,
        bytes_accessed=(x_tiles.size * 2 + taps * c1 * c2 * 4 + 2 * c2 * 4
                        + n * t_tiles * rt * w_tile * c2 * out_bytes),
    )

    out = pl.pallas_call(
        kernel,
        out_shape=jax.ShapeDtypeStruct((n, t_tiles, rt * w_tile, c2), out_dtype),
        grid=(n, t_tiles),
        in_specs=[
            pl.BlockSpec((None, None, rt + 2 * pad, w2p, c1),
                         lambda ni, ti: (ni, ti, 0, 0, 0)),
            pl.BlockSpec((taps, c1, c2), lambda ni, ti: (0, 0, 0)),
            pl.BlockSpec((1, c2), lambda ni, ti: (0, 0)),
            pl.BlockSpec((1, c2), lambda ni, ti: (0, 0)),
        ],
        out_specs=pl.BlockSpec((None, None, rt * w_tile, c2),
                               lambda ni, ti: (ni, ti, 0, 0)),
        compiler_params=pltpu.CompilerParams(
            dimension_semantics=("parallel", "parallel"),
            vmem_limit_bytes=vmem_limit),
        cost_estimate=cost,
    )(x_tiles, w_taps, scale, bias)

    # (N, T, rt*Wt, C2) -> (N, H, Wt, C2) -> drop width pad -> NCHW (PyTorch layout).
    out = out.reshape(n, h, w_tile, c2)[:, :, :w, :]
    return jnp.transpose(out, (0, 3, 1, 2))


def _reference(x_nchw, weight, bn_gamma, bn_beta, bn_mean, bn_var, *, eps=1e-5, pad=1):
    """Pure-JAX reference (NCHW conv + BN(eval) + SiLU)."""
    y = lax.conv_general_dilated(
        x_nchw, weight, window_strides=(1, 1),
        padding=((pad, pad), (pad, pad)),
        dimension_numbers=("NCHW", "OIHW", "NCHW"))
    scale = bn_gamma / jnp.sqrt(bn_var + eps)
    bias = bn_beta - bn_mean * scale
    y = y * scale[None, :, None, None] + bias[None, :, None, None]
    return y * jax.nn.sigmoid(y)


if __name__ == "__main__":
    key = jax.random.PRNGKey(0)
    k_x, k_w, k_g, k_b, k_m, k_v = jax.random.split(key, 6)

    N, C1, H, W = 2, 4, 16, 16
    C2, K = 8, 3

    x = jax.random.normal(k_x, (N, C1, H, W), dtype=jnp.float32)
    weight = jax.random.normal(k_w, (C2, C1, K, K), dtype=jnp.float32) * 0.1
    bn_gamma = 1.0 + 0.1 * jax.random.normal(k_g, (C2,), dtype=jnp.float32)
    bn_beta = 0.1 * jax.random.normal(k_b, (C2,), dtype=jnp.float32)
    bn_mean = 0.1 * jax.random.normal(k_m, (C2,), dtype=jnp.float32)
    bn_var = jnp.abs(jax.random.normal(k_v, (C2,), dtype=jnp.float32)) + 0.5

    ref = _reference(x, weight, bn_gamma, bn_beta, bn_mean, bn_var, pad=K // 2)

    # Explicit multi-row-tile path: grid (2, 2), overlapping halo row slabs.
    run_tiled = jax.jit(functools.partial(conv_bn_silu, k=K, pad=K // 2, row_tile=8))
    out = jax.block_until_ready(run_tiled(x, weight, bn_gamma, bn_beta, bn_mean, bn_var))
    assert out.shape == (N, C2, H, W)
    # bf16 activation storage (f32 compute everywhere else) -> slightly relaxed tolerance.
    assert jnp.allclose(out, ref, atol=2e-2, rtol=2e-2), "mismatch vs JAX reference (tiled)"

    # VMEM-budget heuristic path (one row tile per image here).
    run_auto = jax.jit(functools.partial(conv_bn_silu, k=K, pad=K // 2))
    out2 = jax.block_until_ready(run_auto(x, weight, bn_gamma, bn_beta, bn_mean, bn_var))
    assert jnp.allclose(out2, ref, atol=2e-2, rtol=2e-2), "mismatch vs JAX reference (auto)"

    print("KERNEL_OK")
</pallas_src>

<mosaic_0001>
module attributes {stable_mosaic.version = 11 : i64} {
  func.func @kernel(%arg0: i32, %arg1: i32, %arg2: memref<1x1x10x18x4xbf16, #tpu.memory_space<vmem>>, %arg3: memref<9x4x8xf32, #tpu.memory_space<vmem>>, %arg4: memref<1x8xf32, #tpu.memory_space<vmem>>, %arg5: memref<1x8xf32, #tpu.memory_space<vmem>>, %arg6: memref<1x1x128x8xf32, #tpu.memory_space<vmem>>) attributes {dimension_semantics = [#tpu.dimension_semantics<parallel>, #tpu.dimension_semantics<parallel>], iteration_bounds = array<i64: 2, 2>, scalar_prefetch = 0 : i64, scratch_operands = 0 : i64, tpu.core_type = #tpu.core_type<tc>, window_params = [{transform_indices = @transform_0, window_bounds = array<i64: 1, 1, 10, 18, 4>}, {pipeline_mode = #tpu.pipeline_mode<synchronous>, transform_indices = @transform_1, window_bounds = array<i64: 9, 4, 8>}, {pipeline_mode = #tpu.pipeline_mode<synchronous>, transform_indices = @transform_2, window_bounds = array<i64: 1, 8>}, {pipeline_mode = #tpu.pipeline_mode<synchronous>, transform_indices = @transform_3, window_bounds = array<i64: 1, 8>}, {transform_indices = @transform_4, window_bounds = array<i64: 1, 1, 128, 8>}]} {
    %c0 = arith.constant 0 : index
    %c0_0 = arith.constant 0 : index
    %c0_1 = arith.constant 0 : index
    %c0_2 = arith.constant 0 : index
    %c0_3 = arith.constant 0 : index
    %0 = vector.load %arg2[%c0, %c0_0, %c0_1, %c0_2, %c0_3] : memref<1x1x10x18x4xbf16, #tpu.memory_space<vmem>>, vector<1x1x10x18x4xbf16>
    %1 = vector.shape_cast %0 : vector<1x1x10x18x4xbf16> to vector<10x18x4xbf16>
    %2 = arith.extf %1 : vector<10x18x4xbf16> to vector<10x18x4xf32>
    %cst = arith.constant 0.000000e+00 : f32
    %3 = vector.broadcast %cst : f32 to vector<128x8xf32>
    %4 = vector.extract_strided_slice %2 {offsets = [0, 0, 0], sizes = [8, 16, 4], strides = [1, 1, 1]} : vector<10x18x4xf32> to vector<8x16x4xf32>
    %5 = vector.shape_cast %4 : vector<8x16x4xf32> to vector<128x4xf32>
    %c0_4 = arith.constant 0 : index
    %c0_5 = arith.constant 0 : index
    %c0_6 = arith.constant 0 : index
    %6 = vector.load %arg3[%c0_4, %c0_5, %c0_6] : memref<9x4x8xf32, #tpu.memory_space<vmem>>, vector<1x4x8xf32>
    %7 = vector.shape_cast %6 : vector<1x4x8xf32> to vector<4x8xf32>
    %cst_7 = arith.constant dense<0.000000e+00> : vector<128x8xf32>
    %8 = tpu.matmul %5, %7, %cst_7 {dimension_numbers = #tpu.dot_dimension_numbers<[1], [0], [0], [1], [0, 0, 1, 1], [], []>} : vector<128x4xf32>, vector<4x8xf32>, vector<128x8xf32> -> vector<128x8xf32>
    %9 = arith.addf %3, %8 : vector<128x8xf32>
    %10 = vector.extract_strided_slice %2 {offsets = [0, 1, 0], sizes = [8, 16, 4], strides = [1, 1, 1]} : vector<10x18x4xf32> to vector<8x16x4xf32>
    %11 = vector.shape_cast %10 : vector<8x16x4xf32> to vector<128x4xf32>
    %c1 = arith.constant 1 : index
    %c0_8 = arith.constant 0 : index
    %c0_9 = arith.constant 0 : index
    %12 = vector.load %arg3[%c1, %c0_8, %c0_9] : memref<9x4x8xf32, #tpu.memory_space<vmem>>, vector<1x4x8xf32>
    %13 = vector.shape_cast %12 : vector<1x4x8xf32> to vector<4x8xf32>
    %cst_10 = arith.constant dense<0.000000e+00> : vector<128x8xf32>
    %14 = tpu.matmul %11, %13, %cst_10 {dimension_numbers = #tpu.dot_dimension_numbers<[1], [0], [0], [1], [0, 0, 1, 1], [], []>} : vector<128x4xf32>, vector<4x8xf32>, vector<128x8xf32> -> vector<128x8xf32>
    %15 = arith.addf %9, %14 : vector<128x8xf32>
    %16 = vector.extract_strided_slice %2 {offsets = [0, 2, 0], sizes = [8, 16, 4], strides = [1, 1, 1]} : vector<10x18x4xf32> to vector<8x16x4xf32>
    %17 = vector.shape_cast %16 : vector<8x16x4xf32> to vector<128x4xf32>
    %c2 = arith.constant 2 : index
    %c0_11 = arith.constant 0 : index
    %c0_12 = arith.constant 0 : index
    %18 = vector.load %arg3[%c2, %c0_11, %c0_12] : memref<9x4x8xf32, #tpu.memory_space<vmem>>, vector<1x4x8xf32>
    %19 = vector.shape_cast %18 : vector<1x4x8xf32> to vector<4x8xf32>
    %cst_13 = arith.constant dense<0.000000e+00> : vector<128x8xf32>
    %20 = tpu.matmul %17, %19, %cst_13 {dimension_numbers = #tpu.dot_dimension_numbers<[1], [0], [0], [1], [0, 0, 1, 1], [], []>} : vector<128x4xf32>, vector<4x8xf32>, vector<128x8xf32> -> vector<128x8xf32>
    %21 = arith.addf %15, %20 : vector<128x8xf32>
    %22 = vector.extract_strided_slice %2 {offsets = [1, 0, 0], sizes = [8, 16, 4], strides = [1, 1, 1]} : vector<10x18x4xf32> to vector<8x16x4xf32>
    %23 = vector.shape_cast %22 : vector<8x16x4xf32> to vector<128x4xf32>
    %c3 = arith.constant 3 : index
    %c0_14 = arith.constant 0 : index
    %c0_15 = arith.constant 0 : index
    %24 = vector.load %arg3[%c3, %c0_14, %c0_15] : memref<9x4x8xf32, #tpu.memory_space<vmem>>, vector<1x4x8xf32>
    %25 = vector.shape_cast %24 : vector<1x4x8xf32> to vector<4x8xf32>
    %cst_16 = arith.constant dense<0.000000e+00> : vector<128x8xf32>
    %26 = tpu.matmul %23, %25, %cst_16 {dimension_numbers = #tpu.dot_dimension_numbers<[1], [0], [0], [1], [0, 0, 1, 1], [], []>} : vector<128x4xf32>, vector<4x8xf32>, vector<128x8xf32> -> vector<128x8xf32>
    %27 = arith.addf %21, %26 : vector<128x8xf32>
    %28 = vector.extract_strided_slice %2 {offsets = [1, 1, 0], sizes = [8, 16, 4], strides = [1, 1, 1]} : vector<10x18x4xf32> to vector<8x16x4xf32>
    %29 = vector.shape_cast %28 : vector<8x16x4xf32> to vector<128x4xf32>
    %c4 = arith.constant 4 : index
    %c0_17 = arith.constant 0 : index
    %c0_18 = arith.constant 0 : index
    %30 = vector.load %arg3[%c4, %c0_17, %c0_18] : memref<9x4x8xf32, #tpu.memory_space<vmem>>, vector<1x4x8xf32>
    %31 = vector.shape_cast %30 : vector<1x4x8xf32> to vector<4x8xf32>
    %cst_19 = arith.constant dense<0.000000e+00> : vector<128x8xf32>
    %32 = tpu.matmul %29, %31, %cst_19 {dimension_numbers = #tpu.dot_dimension_numbers<[1], [0], [0], [1], [0, 0, 1, 1], [], []>} : vector<128x4xf32>, vector<4x8xf32>, vector<128x8xf32> -> vector<128x8xf32>
    %33 = arith.addf %27, %32 : vector<128x8xf32>
    %34 = vector.extract_strided_slice %2 {offsets = [1, 2, 0], sizes = [8, 16, 4], strides = [1, 1, 1]} : vector<10x18x4xf32> to vector<8x16x4xf32>
    %35 = vector.shape_cast %34 : vector<8x16x4xf32> to vector<128x4xf32>
    %c5 = arith.constant 5 : index
    %c0_20 = arith.constant 0 : index
    %c0_21 = arith.constant 0 : index
    %36 = vector.load %arg3[%c5, %c0_20, %c0_21] : memref<9x4x8xf32, #tpu.memory_space<vmem>>, vector<1x4x8xf32>
    %37 = vector.shape_cast %36 : vector<1x4x8xf32> to vector<4x8xf32>
    %cst_22 = arith.constant dense<0.000000e+00> : vector<128x8xf32>
    %38 = tpu.matmul %35, %37, %cst_22 {dimension_numbers = #tpu.dot_dimension_numbers<[1], [0], [0], [1], [0, 0, 1, 1], [], []>} : vector<128x4xf32>, vector<4x8xf32>, vector<128x8xf32> -> vector<128x8xf32>
    %39 = arith.addf %33, %38 : vector<128x8xf32>
    %40 = vector.extract_strided_slice %2 {offsets = [2, 0, 0], sizes = [8, 16, 4], strides = [1, 1, 1]} : vector<10x18x4xf32> to vector<8x16x4xf32>
    %41 = vector.shape_cast %40 : vector<8x16x4xf32> to vector<128x4xf32>
    %c6 = arith.constant 6 : index
    %c0_23 = arith.constant 0 : index
    %c0_24 = arith.constant 0 : index
    %42 = vector.load %arg3[%c6, %c0_23, %c0_24] : memref<9x4x8xf32, #tpu.memory_space<vmem>>, vector<1x4x8xf32>
    %43 = vector.shape_cast %42 : vector<1x4x8xf32> to vector<4x8xf32>
    %cst_25 = arith.constant dense<0.000000e+00> : vector<128x8xf32>
    %44 = tpu.matmul %41, %43, %cst_25 {dimension_numbers = #tpu.dot_dimension_numbers<[1], [0], [0], [1], [0, 0, 1, 1], [], []>} : vector<128x4xf32>, vector<4x8xf32>, vector<128x8xf32> -> vector<128x8xf32>
    %45 = arith.addf %39, %44 : vector<128x8xf32>
    %46 = vector.extract_strided_slice %2 {offsets = [2, 1, 0], sizes = [8, 16, 4], strides = [1, 1, 1]} : vector<10x18x4xf32> to vector<8x16x4xf32>
    %47 = vector.shape_cast %46 : vector<8x16x4xf32> to vector<128x4xf32>
    %c7 = arith.constant 7 : index
    %c0_26 = arith.constant 0 : index
    %c0_27 = arith.constant 0 : index
    %48 = vector.load %arg3[%c7, %c0_26, %c0_27] : memref<9x4x8xf32, #tpu.memory_space<vmem>>, vector<1x4x8xf32>
    %49 = vector.shape_cast %48 : vector<1x4x8xf32> to vector<4x8xf32>
    %cst_28 = arith.constant dense<0.000000e+00> : vector<128x8xf32>
    %50 = tpu.matmul %47, %49, %cst_28 {dimension_numbers = #tpu.dot_dimension_numbers<[1], [0], [0], [1], [0, 0, 1, 1], [], []>} : vector<128x4xf32>, vector<4x8xf32>, vector<128x8xf32> -> vector<128x8xf32>
    %51 = arith.addf %45, %50 : vector<128x8xf32>
    %52 = vector.extract_strided_slice %2 {offsets = [2, 2, 0], sizes = [8, 16, 4], strides = [1, 1, 1]} : vector<10x18x4xf32> to vector<8x16x4xf32>
    %53 = vector.shape_cast %52 : vector<8x16x4xf32> to vector<128x4xf32>
    %c8 = arith.constant 8 : index
    %c0_29 = arith.constant 0 : index
    %c0_30 = arith.constant 0 : index
    %54 = vector.load %arg3[%c8, %c0_29, %c0_30] : memref<9x4x8xf32, #tpu.memory_space<vmem>>, vector<1x4x8xf32>
    %55 = vector.shape_cast %54 : vector<1x4x8xf32> to vector<4x8xf32>
    %cst_31 = arith.constant dense<0.000000e+00> : vector<128x8xf32>
    %56 = tpu.matmul %53, %55, %cst_31 {dimension_numbers = #tpu.dot_dimension_numbers<[1], [0], [0], [1], [0, 0, 1, 1], [], []>} : vector<128x4xf32>, vector<4x8xf32>, vector<128x8xf32> -> vector<128x8xf32>
    %57 = arith.addf %51, %56 : vector<128x8xf32>
    %c0_32 = arith.constant 0 : index
    %c0_33 = arith.constant 0 : index
    %58 = vector.load %arg4[%c0_32, %c0_33] : memref<1x8xf32, #tpu.memory_space<vmem>>, vector<1x8xf32>
    %59 = vector.broadcast %58 : vector<1x8xf32> to vector<128x8xf32>
    %60 = arith.mulf %57, %59 : vector<128x8xf32>
    %c0_34 = arith.constant 0 : index
    %c0_35 = arith.constant 0 : index
    %61 = vector.load %arg5[%c0_34, %c0_35] : memref<1x8xf32, #tpu.memory_space<vmem>>, vector<1x8xf32>
    %62 = vector.broadcast %61 : vector<1x8xf32> to vector<128x8xf32>
    %63 = arith.addf %60, %62 : vector<128x8xf32>
    %64 = arith.negf %63 : vector<128x8xf32>
    %65 = math.exp %64 : vector<128x8xf32>
    %cst_36 = arith.constant 1.000000e+00 : f32
    %66 = vector.broadcast %cst_36 : f32 to vector<128x8xf32>
    %67 = arith.addf %66, %65 : vector<128x8xf32>
    %68 = arith.divf %66, %67 : vector<128x8xf32>
    %69 = arith.mulf %63, %68 : vector<128x8xf32>
    %c0_37 = arith.constant 0 : index
    %c0_38 = arith.constant 0 : index
    %c0_39 = arith.constant 0 : index
    %c0_40 = arith.constant 0 : index
    %70 = vector.load %arg6[%c0_37, %c0_38, %c0_39, %c0_40] : memref<1x1x128x8xf32, #tpu.memory_space<vmem>>, vector<1x1x128x8xf32>
    %71 = vector.shape_cast %70 : vector<1x1x128x8xf32> to vector<128x8xf32>
    %72 = vector.shape_cast %69 : vector<128x8xf32> to vector<1x1x128x8xf32>
    tpu.vector_store %arg6[%c0_37, %c0_38, %c0_39, %c0_40], %72 {strides = array<i32>} : memref<1x1x128x8xf32, #tpu.memory_space<vmem>>, vector<1x1x128x8xf32>,
    return
  }
  func.func @transform_0(%arg0: i32, %arg1: i32) -> (i32, i32, i32, i32, i32) {
    %c0_i32 = arith.constant 0 : i32
    %c0_i32_0 = arith.constant 0 : i32
    %c0_i32_1 = arith.constant 0 : i32
    %c0_i32_2 = arith.constant 0 : i32
    return %arg0, %arg1, %c0_i32, %c0_i32_0, %c0_i32_1 : i32, i32, i32, i32, i32
  }
  func.func @transform_1(%arg0: i32, %arg1: i32) -> (i32, i32, i32) {
    %c0_i32 = arith.constant 0 : i32
    %c0_i32_0 = arith.constant 0 : i32
    %c0_i32_1 = arith.constant 0 : i32
    %c0_i32_2 = arith.constant 0 : i32
    return %c0_i32, %c0_i32_0, %c0_i32_1 : i32, i32, i32
  }
  func.func @transform_2(%arg0: i32, %arg1: i32) -> (i32, i32) {
    %c0_i32 = arith.constant 0 : i32
    %c0_i32_0 = arith.constant 0 : i32
    %c0_i32_1 = arith.constant 0 : i32
    return %c0_i32, %c0_i32_0 : i32, i32
  }
  func.func @transform_3(%arg0: i32, %arg1: i32) -> (i32, i32) {
    %c0_i32 = arith.constant 0 : i32
    %c0_i32_0 = arith.constant 0 : i32
    %c0_i32_1 = arith.constant 0 : i32
    return %c0_i32, %c0_i32_0 : i32, i32
  }
  func.func @transform_4(%arg0: i32, %arg1: i32) -> (i32, i32, i32, i32) {
    %c0_i32 = arith.constant 0 : i32
    %c0_i32_0 = arith.constant 0 : i32
    %c0_i32_1 = arith.constant 0 : i32
    return %arg0, %arg1, %c0_i32, %c0_i32_0 : i32, i32, i32, i32
  }
}

</mosaic_0001>

<bundles_post_ra>
// kernel: conv_bn_silu.1
= control target key start
LH: loop header
LB: loop body
LE: loop exit
PB: predicated region body
PF: predicated region fallthrough
CT: control target
= control target key end

     0   :  { %s3181_s15 = smov 0   ;;  %s3183_s16 = smov 0   ;;  %s3985_s0 = inlined_call_operand.vmem [shape: bf16[2,2,10,18,4], index: 0, kind: input, shape index: {}]   ;;  %s3986_s1 = inlined_call_operand.vmem [shape: f32[9,4,8], index: 1, kind: input, shape index: {}]   ;;  %s3987_s2 = inlined_call_operand.vmem [shape: f32[1,8], index: 2, kind: input, shape index: {}]   ;;  %s3988_s3 = inlined_call_operand.vmem [shape: f32[1,8], index: 3, kind: input, shape index: {}]   ;;  %s3989_s4 = inlined_call_operand.vmem [shape: f32[2,2,128,8], index: 4, kind: output, shape index: {}]  }
   0x1   :  { %s3185_s17 = smov 0   ;;  %s3187_s18 = smov 0  }
   0x2   :  { %s3189_s19 = smov 0  }
   0x3 LB: > { %s23_s20 = sadd.s32 1, %s3146_s17  ;;  %s26_s21 = sadd.s32 1, %s3150_s18  ;;  %s3154_s19 = sphi %s3189_s19, %s14_s19   ;;  %s3150_s18 = sphi %s3187_s18, %s3997_s18   ;;  %s3146_s17 = sphi %s3185_s17, %s3996_s17   ;;  %s3142_s16 = sphi %s3183_s16, %s3995_s16   ;;  %s3138_s15 = sphi %s3181_s15, %s3994_s15  }
   0x4   : > { %p24_p0 = scmp.ge.s32.totalorder %s23_s20, 2  ;;  %p2283_p1 = scmp.ge.s32.totalorder %s3154_s19, 1 }
   0x5   : > { %p182_p2 = scmp.lt.s32.totalorder %s3154_s19, 5 }
   0x6   : > { %s3999_s20 = smov (%p24_p0, %s23_s20), 0  ;;  %s4001_s21 = smov (!%p24_p0, %s26_s21), %s3150_s18 }
   0x7   : > { %p183_p3 = pnand %p2283_p1, %p182_p2  ;;  %p28_p4 = scmp.ge.s32.totalorder %s4001_s21, 2 }
   0x8   : > { %v2288_v0 = vld [vmem:[%s3986_s1 + $0x4] sm:$0xf] (!%p183_p3)  ;;  %vm395_vm0 = vcmask (!%p183_p3), 1043456   ;;  %v3217_v1 = vld [vmem:[%s3986_s1 + $0x10] sm:$0xf] (!%p183_p3)  ;;  %p216_p5 = scmp.lt.s32.totalorder (!%p183_p3), %s3142_s16, 1 }
   0x9   : > { %s4003_s21 = smov (%p28_p4, %s4001_s21), 0  ;;  %186 = sbr.rel (%p183_p3) target bundleno = 420 (0x1a4), region = 36 }
   0xa   : > { %2646 = vmatprep.subr.msk.mxu1 (!%p183_p3), %vm395_vm0, %v2288_v0  ;;  %2750 = vmatprep.subr.msk.mxu0 (!%p183_p3), %vm395_vm0, %v3217_v1  ;;  %p218_p6 = scmp.lt.s32.totalorder (!%p183_p3), %s3138_s15, 1  ;;  %v294_v2 = vld [vmem:[%s3986_s1] sm:$0xf] (!%p183_p3)  ;;  %v2377_v3 = vld [vmem:[%s3986_s1 + $0x14] sm:$0xf] (!%p183_p3)  ;;  %vm319_vm1 = vcmask (!%p183_p3), 1046528  }
   0xb   : > { %2647 = vmatpush3.msk.msra.mxu1 (!%p183_p3), %vm395_vm0, %v2288_v0  ;;  %2751 = vmatpush3.msk.msra.mxu0 (!%p183_p3), %vm395_vm0, %v3217_v1  ;;  %vm362_vm2 = vcmask (!%p183_p3), 31744   ;;  %v3308_v40 = vld [vmem:[%s3986_s1 + $0x18] sm:$0xf] (!%p183_p3)  ;;  %v3313_v41 = vld [vmem:[%s3986_s1 + $0x8] sm:$0xf] (!%p183_p3)  ;;  %vm724_vm3 = vcmask (!%p183_p3), 1045504  }
   0xc   : > { %2672 = vmatprep.subr.msk.mxu1 (!%p183_p3), %vm395_vm0, %v294_v2  ;;  %2776 = vmatprep.subr.msk.mxu0 (!%p183_p3), %vm395_vm0, %v2377_v3  ;;  %vm2167_vm4 = vcmask (!%p183_p3), 64512  }
  0x10   : > { %s4005_s16 = smov (!%p216_p5, %s3142_s16), 1  ;;  %s4007_s15 = smov (!%p218_p6, %s3138_s15), 1 }
  0x11   : > { %s3011_s30 = smul.u32 60, %s4005_s16 }
  0x12   : > { %s3010_s5 = smul.u32 30, %s4007_s15 }
  0x14   : > { %s222_s6 = sadd.s32 %s3011_s30, %s3010_s5 }
  0x15   : > { %s2284_s7 = sshll.u32 %s222_s6, 2  ;;  %s2285_s6 = sshll.u32 %s4007_s15, 4 }
  0x16   : > { %s3242_s10 = scalar_lea.vmem %s3985_s0, %s2284_s7  ;;  %s2286_s7 = sshll.u32 %s4005_s16, 5 }
  0x17   : > { %v2470_v4 = vld [vmem:[%s3242_s10] sm:$0xff]   ;;  %v237_v5 = vld [vmem:[%s3242_s10 + $0xc] sm:$0xff]   ;;  %v3247_v6 = vld [vmem:[%s3242_s10 + $0x8] sm:$0x1]  ;;  %s3889_s15 = sadd.s32 %s2286_s7, %s2285_s6 }
  0x18   : > { %v3249_v7 = vunpack.c.l.bf16 %v2470_v4  ;;  %v3251_v8 = vunpack.c.h.bf16 %v2470_v4  ;;  %v3253_v9 = vunpack.c.l.bf16 %v237_v5  ;;  %v3255_v10 = vunpack.c.h.bf16 %v237_v5  ;;  %v3258_v11 = vld [vmem:[%s3242_s10 + $0x14] sm:$0x1]  ;;  %v2489_v12 = vld [vmem:[%s3242_s10 + $0x18] sm:$0xff]   ;;  %v3268_v17 = vld [vmem:[%s3242_s10 + $0x20] sm:$0x1]  ;;  %s2287_s16 = sshll.u32 %s3889_s15, 3 }
  0x19   : > { %v3990_v13 = vunpack.c.l.bf16 %v3247_v6  ;;  %v269_v14 = vunpack.c.l.bf16 %v3258_v11  ;;  %v3263_v15 = vunpack.c.l.bf16 %v2489_v12  ;;  %v3265_v16 = vunpack.c.h.bf16 %v2489_v12  ;;  %v243_v22 = vld [vmem:[%s3242_s10 + $0x24] sm:$0xff]   ;;  %v3278_v25 = vld [vmem:[%s3242_s10 + $0x2c] sm:$0x1]  ;;  %v2490_v26 = vld [vmem:[%s3242_s10 + $0x30] sm:$0xff]  }
  0x1a   : > { %v320_v18 = vrot.slane %v3249_v7, 1  ;;  %v321_v19 = vrot.slane %v3251_v8, 1  ;;  %v325_v20 = vrot.slane %v3253_v9, 1  ;;  %v326_v21 = vrot.slane %v3255_v10, 1  ;;  %v3286_v31 = vld [vmem:[%s3242_s10 + $0x38] sm:$0x1] }
  0x1b   : > { %v323_v23 = vrot.slane %v3990_v13, 1  ;;  %v328_v24 = vrot.slane %v269_v14, 1  ;;  %v330_v29 = vrot.slane %v3263_v15, 1  ;;  %v331_v30 = vrot.slane %v3265_v16, 1  ;;  %v249_v51 = vld [vmem:[%s3242_s10 + $0x3c] sm:$0xff]   ;;  %v2491_v61 = vld [vmem:[%s3242_s10 + $0x48] sm:$0xff]  }
  0x1c   : > { %v322_v27 = vsel %vm319_vm1, %v320_v18, %v321_v19  ;;  %v327_v28 = vsel %vm319_vm1, %v325_v20, %v326_v21  ;;  %v272_v34 = vunpack.c.l.bf16 %v3268_v17  ;;  %v3293_v35 = vunpack.c.l.bf16 %v243_v22  ;;  %v3362_v60 = vld [vmem:[%s3242_s10 + $0x44] sm:$0x1]  ;;  %v3387_v12 = vld [vmem:[%s3242_s10 + $0x50] sm:$0x1]  ;;  %v255_v18 = vld [vmem:[%s3242_s10 + $0x54] sm:$0xff]  }
  0x1d   : > { %2648 = vmatprep.mubr.msk.f32.mxu1 %vm362_vm2, %v322_v27  ;;  %2752 = vmatprep.mubr.msk.f32.mxu0 %vm362_vm2, %v327_v28  ;;  %v324_v32 = vsel %vm319_vm1, %v321_v19, %v323_v23  ;;  %v329_v33 = vsel %vm319_vm1, %v326_v21, %v328_v24  ;;  %v3298_v36 = vsel %vm319_vm1, %v330_v29, %v331_v30  ;;  %v3300_v37 = vunpack.c.h.bf16 %v243_v22 }
  0x1e   : > { %2649 = vmatmul.mubr.msk.f32.vlgmr.msra.gmra.mrb[0].mxu1 %vm362_vm2, %v324_v32  ;;  %2753 = vmatmul.mubr.msk.f32.vlgmr.msra.gmra.mrb[0].mxu0 %vm362_vm2, %v329_v33  ;;  %v275_v38 = vunpack.c.l.bf16 %v3278_v25  ;;  %v3303_v39 = vunpack.c.l.bf16 %v2490_v26  ;;  %v333_v42 = vrot.slane %v272_v34, 1  ;;  %v335_v43 = vrot.slane %v3293_v35, 1  ;;  %v3418_v32 = vld [vmem:[%s3242_s10 + $0x5c] sm:$0x1] }
  0x1f   : > { %2673 = vmatpush3.msk.msra.mxu1 %vm395_vm0, %v294_v2  ;;  %2777 = vmatpush3.msk.msra.mxu0 %vm395_vm0, %v2377_v3  ;;  %v3318_v44 = vunpack.c.h.bf16 %v2490_v26  ;;  %v278_v45 = vunpack.c.l.bf16 %v3286_v31  ;;  %v336_v46 = vrot.slane %v3300_v37, 1  ;;  %v730_v55 = vrot.slane %v3253_v9, 2 }
  0x20   : > { %2651 = vmatprep.mubr.msk.f32.mxu1 %vm362_vm2, %v327_v28  ;;  %2755 = vmatprep.mubr.msk.f32.mxu0 %vm362_vm2, %v3298_v36  ;;  %v338_v47 = vrot.slane %v275_v38, 1  ;;  %v340_v48 = vrot.slane %v3303_v39, 1  ;;  %v3329_v49 = vsel %vm319_vm1, %v331_v30, %v333_v42  ;;  %v731_v57 = vrot.slane %v3255_v10, 2 }
  0x21   : > { %v341_v50 = vrot.slane %v3318_v44, 1  ;;  %2802 = vmatprep.subr.msk.mxu0 %vm395_vm0, %v3308_v40  ;;  %2698 = vmatprep.subr.msk.mxu1 %vm395_vm0, %v3313_v41  ;;  %v3341_v52 = vsel %vm319_vm1, %v335_v43, %v336_v46  ;;  %v343_v54 = vrot.slane %v278_v45, 1  ;;  %v3357_v58 = vunpack.c.l.bf16 %v249_v51 }
  0x22   : > { %2652 = vmatmul.mubr.msk.f32.gmra.mrb[2].mxu1 %vm362_vm2, %v329_v33  ;;  %2756 = vmatmul.mubr.msk.f32.gmra.mrb[2].mxu0 %vm362_vm2, %v3329_v49  ;;  %v3348_v53 = vsel %vm319_vm1, %v336_v46, %v338_v47  ;;  %v3359_v59 = vunpack.c.h.bf16 %v249_v51  ;;  %v733_v62 = vrot.slane %v269_v14, 2  ;;  %v281_v0 = vunpack.c.l.bf16 %v3362_v60 }
  0x23   : > { %2654 = vmatprep.mubr.msk.f32.mxu1 %vm362_vm2, %v3298_v36  ;;  %2758 = vmatprep.mubr.msk.f32.mxu0 %vm362_vm2, %v3341_v52  ;;  %v3354_v56 = vsel %vm319_vm1, %v340_v48, %v341_v50  ;;  %v3374_v63 = vsel %vm319_vm1, %v341_v50, %v343_v54  ;;  %v3377_v2 = vunpack.c.l.bf16 %v2491_v61  ;;  %v3379_v3 = vunpack.c.h.bf16 %v2491_v61 }
  0x24   : > { %v3382_v4 = vsel %vm724_vm3, %v730_v55, %v731_v57  ;;  %v345_v5 = vrot.slane %v3357_v58, 1  ;;  %v346_v11 = vrot.slane %v3359_v59, 1  ;;  %v735_v14 = vrot.slane %v3263_v15, 2  ;;  %v261_v55 = vld [vmem:[%s3242_s10 + $0x6c] sm:$0xff]  }
  0x25   : > { %v736_v17 = vrot.slane %v3265_v16, 2  ;;  %v3397_v19 = vsel %vm724_vm3, %v731_v57, %v733_v62  ;;  %v738_v20 = vrot.slane %v272_v34, 2  ;;  %v740_v21 = vrot.slane %v3293_v35, 2  ;;  %v3426_v34 = vld [vmem:[%s3986_s1 + $0x1c] sm:$0xf] }
  0x26   : > { %2655 = vmatmul.mubr.msk.f32.gmra.mrb[4].mxu1 %vm362_vm2, %v3329_v49  ;;  %2759 = vmatmul.mubr.msk.f32.gmra.mrb[4].mxu0 %vm362_vm2, %v3348_v53  ;;  %v741_v22 = vrot.slane %v3300_v37, 2  ;;  %v348_v23 = vrot.slane %v281_v0, 1  ;;  %v350_v24 = vrot.slane %v3377_v2, 1  ;;  %v351_v26 = vrot.slane %v3379_v3, 1 }
  0x27   : > { %2657 = vmatprep.mubr.msk.f32.mxu1 %vm362_vm2, %v3341_v52  ;;  %2761 = vmatprep.mubr.msk.f32.mxu0 %vm362_vm2, %v3354_v56  ;;  %v284_v27 = vunpack.c.l.bf16 %v3387_v12  ;;  %v3411_v28 = vsel %vm319_vm1, %v345_v5, %v346_v11  ;;  %v3413_v29 = vunpack.c.l.bf16 %v255_v18  ;;  %v3415_v30 = vunpack.c.h.bf16 %v255_v18 }
  0x28   : > { %v3421_v33 = vsel %vm724_vm3, %v735_v14, %v736_v17  ;;  %v3433_v42 = vsel %vm724_vm3, %v736_v17, %v738_v20  ;;  %v3436_v43 = vsel %vm724_vm3, %v740_v21, %v741_v22  ;;  %v743_v46 = vrot.slane %v275_v38, 2  ;;  %v263_v17 = vld [vmem:[%s3242_s10 + $0x74] sm:$0x1] }
  0x29   : > { %v3445_v47 = vsel %vm319_vm1, %v346_v11, %v348_v23  ;;  %v3448_v48 = vsel %vm319_vm1, %v350_v24, %v351_v26  ;;  %v353_v50 = vrot.slane %v284_v27, 1  ;;  %v3991_v51 = vunpack.c.l.bf16 %v3418_v32 }
  0x2a   : > { %2658 = vmatmul.mubr.msk.f32.gmra.mrb[6].mxu1 %vm362_vm2, %v3348_v53  ;;  %2762 = vmatmul.mubr.msk.f32.gmra.mrb[6].mxu0 %vm362_vm2, %v3374_v63  ;;  %v355_v25 = vrot.slane %v3413_v29, 1  ;;  %v356_v38 = vrot.slane %v3415_v30, 1  ;;  %v746_v54 = vrot.slane %v3318_v44, 2  ;;  %v3467_v57 = vsel %vm724_vm3, %v741_v22, %v743_v46 }
  0x2b   : > { %2660 = vmatprep.mubr.msk.f32.mxu1 %vm362_vm2, %v3354_v56  ;;  %2778 = vmatprep.mubr.msk.f32.mxu0 %vm362_vm2, %v3382_v4  ;;  %v748_v61 = vrot.slane %v278_v45, 2  ;;  %v3476_v62 = vsel %vm319_vm1, %v351_v26, %v353_v50  ;;  %v358_v5 = vrot.slane %v3991_v51, 1  ;;  %v3480_v11 = vunpack.c.l.bf16 %v261_v55 }
  0x2c   : > { %v3482_v14 = vunpack.c.h.bf16 %v261_v55  ;;  %v3486_v31 = vsel %vm319_vm1, %v355_v25, %v356_v38  ;;  %v750_v18 = vrot.slane %v3357_v58, 2  ;;  %v751_v20 = vrot.slane %v3359_v59, 2 }
  0x2d   : > { %v1659_v21 = vrot.slane %v3480_v11, 1  ;;  %v293_v23 = vunpack.c.l.bf16 %v263_v17  ;;  %v1834_v24 = vrot.slane %v3480_v11, 2  ;;  %v3506_v46 = vsel %vm319_vm1, %v356_v38, %v358_v5 }
  0x2e   : > { %2661 = vmatmul.mubr.msk.f32.gmra.mrb[8].mxu1 %vm362_vm2, %v3374_v63  ;;  %2779 = vmatmul.mubr.msk.f32.vlgmr.msra.gmra.mrb[0].mxu0 %vm362_vm2, %v3397_v19  ;;  %v1660_v22 = vrot.slane %v3482_v14, 1  ;;  %v1835_v26 = vrot.slane %v3482_v14, 2  ;;  %v3509_v50 = vsel %vm724_vm3, %v746_v54, %v748_v61  ;;  %v753_v25 = vrot.slane %v281_v0, 2  ;;  %v2492_v61 = vld [vmem:[%s3242_s10 + $0x60] sm:$0xff]  }
  0x2f   : > { %2803 = vmatpush3.msk.msra.mxu0 %vm395_vm0, %v3308_v40  ;;  %2663 = vmatprep.mubr.msk.f32.mxu1 %vm362_vm2, %v3411_v28  ;;  %v745_v40 = vrot.slane %v3303_v39, 2  ;;  %v3517_v55 = vsel %vm724_vm3, %v750_v18, %v751_v20  ;;  %v1662_v17 = vrot.slane %v293_v23, 1  ;;  %v1837_v51 = vrot.slane %v293_v23, 2 }
  0x30   : > { %2781 = vmatprep.mubr.msk.f32.mxu0 %vm362_vm2, %v3421_v33  ;;  %2828 = vmatprep.subr.msk.mxu0 %vm395_vm0, %v3426_v34  ;;  %v3520_v13 = vsel %vm724_vm3, %v1834_v24, %v1835_v26  ;;  %v755_v38 = vrot.slane %v3377_v2, 2  ;;  %v3540_v5 = vsel %vm724_vm3, %v751_v20, %v753_v25  ;;  %v758_v18 = vrot.slane %v284_v27, 2  ;;  %v3551_v24 = vld [vmem:[%s3242_s10 + $0x68] sm:$0x1]  ;;  %v2341_v20 = vld [vmem:[%s3986_s1 + $0xc] sm:$0xf]  ;;  %s3910_s10 = scalar_lea.vmem %s3989_s4, %s2287_s16 }
  0x31   : > { %v3489_v45 = vsel %vm724_vm3, %v745_v40, %v746_v54  ;;  %v3514_v40 = vsel %vm319_vm1, %v1659_v21, %v1660_v22  ;;  %v756_v54 = vrot.slane %v3379_v3, 2  ;;  %v3530_v60 = vsel %vm319_vm1, %v1660_v22, %v1662_v17 }
  0x32   : > { %2664 = vmatmul.mubr.msk.f32.gmra.mrb[10].mxu1 %vm362_vm2, %v3445_v47  ;;  %2782 = vmatmul.mubr.msk.f32.gmra.mrb[2].mxu0 %vm362_vm2, %v3433_v42  ;;  %v3533_v0 = vsel %vm724_vm3, %v1835_v26, %v1837_v51  ;;  %v760_v21 = vrot.slane %v3413_v29, 2  ;;  %v761_v22 = vrot.slane %v3415_v30, 2  ;;  %v3546_v23 = vunpack.c.l.bf16 %v2492_v61 }
  0x33   : > { %2666 = vmatprep.mubr.msk.f32.mxu1 %vm362_vm2, %v3448_v48  ;;  %2784 = vmatprep.mubr.msk.f32.mxu0 %vm362_vm2, %v3436_v43  ;;  %v3548_v51 = vunpack.c.h.bf16 %v2492_v61  ;;  %v3554_v26 = vsel %vm724_vm3, %v755_v38, %v756_v54  ;;  %v3568_v12 = vsel %vm724_vm3, %v756_v54, %v758_v18  ;;  %v3992_v27 = vunpack.c.l.bf16 %v3418_v32 }
  0x34   : > { %v290_v17 = vunpack.c.l.bf16 %v3551_v24  ;;  %v3576_v38 = vsel %vm724_vm3, %v760_v21, %v761_v22  ;;  %v1311_v61 = vrot.slane %v3546_v23, 2 }
  0x35   : > { %v763_v25 = vrot.slane %v3992_v27, 2  ;;  %v726_v27 = vrot.slane %v3251_v8, 2 }
  0x36   : > { %2667 = vmatmul.mubr.msk.f32.gmra.mrb[12].mxu1 %vm362_vm2, %v3476_v62  ;;  %2785 = vmatmul.mubr.msk.f32.gmra.mrb[4].mxu0 %vm362_vm2, %v3467_v57  ;;  %v1314_v54 = vrot.slane %v290_v17, 2 }
  0x37   : > { %2669 = vmatprep.mubr.msk.f32.mxu1 %vm362_vm2, %v3486_v31  ;;  %2787 = vmatprep.mubr.msk.f32.mxu0 %vm362_vm2, %v3489_v45  ;;  %v3590_v32 = vsel %vm724_vm3, %v761_v22, %v763_v25  ;;  %v2431_v22 = vld [vmem:[%s3986_s1 + $0x20] sm:$0xf]  ;;  %v3993_v25 = vunpack.c.l.bf16 %v3247_v6 }
  0x3a   : > { %2670 = vmatmul.mubr.msk.f32.gmra.mrb[14].mxu1 %vm362_vm2, %v3506_v46  ;;  %2788 = vmatmul.mubr.msk.f32.gmra.mrb[6].mxu0 %vm362_vm2, %v3509_v50 }
  0x3b   : > { %2674 = vmatprep.mubr.msk.f32.mxu1 %vm362_vm2, %v3249_v7  ;;  %2790 = vmatprep.mubr.msk.f32.mxu0 %vm362_vm2, %v3517_v55 }
  0x3e   : > { %2675 = vmatmul.mubr.msk.f32.vlgmr.msra.gmra.mrb[0].mxu1 %vm362_vm2, %v3251_v8  ;;  %2791 = vmatmul.mubr.msk.f32.gmra.mrb[8].mxu0 %vm362_vm2, %v3540_v5  ;;  %v1137_v8 = vrot.slane %v3548_v51, 1 }
  0x3f   : > { %2699 = vmatpush3.msk.msra.mxu1 %vm395_vm0, %v3313_v41  ;;  %2677 = vmatprep.mubr.msk.f32.mxu1 %vm362_vm2, %v3253_v9  ;;  %v1312_v41 = vrot.slane %v3548_v51, 2 }
  0x40   : > { %2793 = vmatprep.mubr.msk.f32.mxu0 %vm362_vm2, %v3554_v26  ;;  %2724 = vmatprep.subr.msk.mxu1 %vm395_vm0, %v2341_v20 }
  0x41   : > { %v3595_v18 = vsel %vm724_vm3, %v1311_v61, %v1312_v41  ;;  %v3606_v21 = vsel %vm724_vm3, %v1312_v41, %v1314_v54  ;;  %v728_v61 = vrot.slane %v3993_v25, 2 }
  0x42   : > { %2678 = vmatmul.mubr.msk.f32.gmra.mrb[2].mxu1 %vm362_vm2, %v3255_v10  ;;  %2794 = vmatmul.mubr.msk.f32.gmra.mrb[10].mxu0 %vm362_vm2, %v3568_v12 }
  0x43   : > { %2680 = vmatprep.mubr.msk.f32.mxu1 %vm362_vm2, %v3263_v15  ;;  %2796 = vmatprep.mubr.msk.f32.mxu0 %vm362_vm2, %v3576_v38  ;;  %v729_v6 = vsel %vm724_vm3, %v726_v27, %v728_v61 }
  0x46   : > { %2681 = vmatmul.mubr.msk.f32.gmra.mrb[4].mxu1 %vm362_vm2, %v3265_v16  ;;  %2797 = vmatmul.mubr.msk.f32.gmra.mrb[12].mxu0 %vm362_vm2, %v3590_v32 }
  0x47   : > { %2683 = vmatprep.mubr.msk.f32.mxu1 %vm362_vm2, %v3293_v35  ;;  %2799 = vmatprep.mubr.msk.f32.mxu0 %vm362_vm2, %v3595_v18 }
  0x4a   : > { %2684 = vmatmul.mubr.msk.f32.gmra.mrb[6].mxu1 %vm362_vm2, %v3300_v37  ;;  %2800 = vmatmul.mubr.msk.f32.gmra.mrb[14].mxu0 %vm362_vm2, %v3606_v21 }
  0x4b   : > { %2686 = vmatprep.mubr.msk.f32.mxu1 %vm362_vm2, %v3303_v39  ;;  %2804 = vmatprep.mubr.msk.f32.mxu0 %vm362_vm2, %v3263_v15 }
  0x4e   : > { %2687 = vmatmul.mubr.msk.f32.gmra.mrb[8].mxu1 %vm362_vm2, %v3318_v44  ;;  %2805 = vmatmul.mubr.msk.f32.vlgmr.msra.gmra.mrb[0].mxu0 %vm362_vm2, %v3265_v16 }
  0x4f   : > { %2829 = vmatpush3.msk.msra.mxu0 %vm395_vm0, %v3426_v34  ;;  %2689 = vmatprep.mubr.msk.f32.mxu1 %vm362_vm2, %v3357_v58  ;;  %v725_v34 = vrot.slane %v3249_v7, 2  ;;  %v1136_v7 = vrot.slane %v3546_v23, 1 }
  0x50   : > { %2807 = vmatprep.mubr.msk.f32.mxu0 %vm362_vm2, %v3293_v35  ;;  %2854 = vmatprep.subr.msk.mxu0 %vm395_vm0, %v2431_v22 }
  0x51   : > { %v727_v41 = vsel %vm724_vm3, %v725_v34, %v726_v27 }
  0x52   : > { %2690 = vmatmul.mubr.msk.f32.gmra.mrb[10].mxu1 %vm362_vm2, %v3359_v59  ;;  %2808 = vmatmul.mubr.msk.f32.gmra.mrb[2].mxu0 %vm362_vm2, %v3300_v37 }
  0x53   : > { %2692 = vmatprep.mubr.msk.f32.mxu1 %vm362_vm2, %v3377_v2  ;;  %2810 = vmatprep.mubr.msk.f32.mxu0 %vm362_vm2, %v3303_v39 }
  0x56   : > { %2693 = vmatmul.mubr.msk.f32.gmra.mrb[12].mxu1 %vm362_vm2, %v3379_v3  ;;  %2811 = vmatmul.mubr.msk.f32.gmra.mrb[4].mxu0 %vm362_vm2, %v3318_v44 }
  0x57   : > { %2695 = vmatprep.mubr.msk.f32.mxu1 %vm362_vm2, %v3413_v29  ;;  %2813 = vmatprep.mubr.msk.f32.mxu0 %vm362_vm2, %v3357_v58 }
  0x5a   : > { %2696 = vmatmul.mubr.msk.f32.gmra.mrb[14].mxu1 %vm362_vm2, %v3415_v30  ;;  %2814 = vmatmul.mubr.msk.f32.gmra.mrb[6].mxu0 %vm362_vm2, %v3359_v59 }
  0x5b   : > { %2700 = vmatprep.mubr.msk.f32.mxu1 %vm362_vm2, %v727_v41  ;;  %2816 = vmatprep.mubr.msk.f32.mxu0 %vm362_vm2, %v3377_v2 }
  0x5e   : > { %2701 = vmatmul.mubr.msk.f32.vlgmr.msra.gmra.mrb[0].mxu1 %vm362_vm2, %v729_v6  ;;  %2817 = vmatmul.mubr.msk.f32.gmra.mrb[8].mxu0 %vm362_vm2, %v3379_v3 }
  0x5f   : > { %2725 = vmatpush3.msk.msra.mxu1 %vm395_vm0, %v2341_v20  ;;  %2703 = vmatprep.mubr.msk.f32.mxu1 %vm362_vm2, %v3382_v4 }
  0x60   : > { %2819 = vmatprep.mubr.msk.f32.mxu0 %vm362_vm2, %v3413_v29  ;;  %2880 = vmatprep.subr.msk.mxu1 %vm395_vm0, %v3217_v1 }
  0x62   : > { %2704 = vmatmul.mubr.msk.f32.gmra.mrb[2].mxu1 %vm362_vm2, %v3397_v19  ;;  %2820 = vmatmul.mubr.msk.f32.gmra.mrb[10].mxu0 %vm362_vm2, %v3415_v30 }
  0x63   : > { %2706 = vmatprep.mubr.msk.f32.mxu1 %vm362_vm2, %v3421_v33  ;;  %2822 = vmatprep.mubr.msk.f32.mxu0 %vm362_vm2, %v3546_v23 }
  0x66   : > { %2707 = vmatmul.mubr.msk.f32.gmra.mrb[4].mxu1 %vm362_vm2, %v3433_v42  ;;  %2823 = vmatmul.mubr.msk.f32.gmra.mrb[12].mxu0 %vm362_vm2, %v3548_v51 }
  0x67   : > { %2709 = vmatprep.mubr.msk.f32.mxu1 %vm362_vm2, %v3436_v43  ;;  %2825 = vmatprep.mubr.msk.f32.mxu0 %vm362_vm2, %v3480_v11 }
  0x6a   : > { %2710 = vmatmul.mubr.msk.f32.gmra.mrb[6].mxu1 %vm362_vm2, %v3467_v57  ;;  %2826 = vmatmul.mubr.msk.f32.gmra.mrb[14].mxu0 %vm362_vm2, %v3482_v14 }
  0x6b   : > { %2712 = vmatprep.mubr.msk.f32.mxu1 %vm362_vm2, %v3489_v45  ;;  %2830 = vmatprep.mubr.msk.f32.mxu0 %vm362_vm2, %v3298_v36  ;;  %v1138_v36 = vsel %vm319_vm1, %v1136_v7, %v1137_v8 }
  0x6e   : > { %2713 = vmatmul.mubr.msk.f32.gmra.mrb[8].mxu1 %vm362_vm2, %v3509_v50  ;;  %2831 = vmatmul.mubr.msk.f32.vlgmr.msra.gmra.mrb[0].mxu0 %vm362_vm2, %v3329_v49 }
  0x6f   : > { %2855 = vmatpush3.msk.msra.mxu0 %vm395_vm0, %v2431_v22  ;;  %2715 = vmatprep.mubr.msk.f32.mxu1 %vm362_vm2, %v3517_v55 }
  0x70   : > { %2833 = vmatprep.mubr.msk.f32.mxu0 %vm362_vm2, %v3341_v52 }
  0x72   : > { %2716 = vmatmul.mubr.msk.f32.gmra.mrb[10].mxu1 %vm362_vm2, %v3540_v5  ;;  %2834 = vmatmul.mubr.msk.f32.gmra.mrb[2].mxu0 %vm362_vm2, %v3348_v53  ;;  %v3825_v53 = vld [vmem:[%s3987_s2] ss:$0 sm:$0xff] }
  0x73   : > { %2718 = vmatprep.mubr.msk.f32.mxu1 %vm362_vm2, %v3554_v26  ;;  %2836 = vmatprep.mubr.msk.f32.mxu0 %vm362_vm2, %v3354_v56 }
  0x76   : > { %2719 = vmatmul.mubr.msk.f32.gmra.mrb[12].mxu1 %vm362_vm2, %v3568_v12  ;;  %2837 = vmatmul.mubr.msk.f32.gmra.mrb[4].mxu0 %vm362_vm2, %v3374_v63 }
  0x77   : > { %2721 = vmatprep.mubr.msk.f32.mxu1 %vm362_vm2, %v3576_v38  ;;  %2839 = vmatprep.mubr.msk.f32.mxu0 %vm362_vm2, %v3411_v28 }
  0x7a   : > { %2722 = vmatmul.mubr.msk.f32.gmra.mrb[14].mxu1 %vm362_vm2, %v3590_v32  ;;  %2840 = vmatmul.mubr.msk.f32.gmra.mrb[6].mxu0 %vm362_vm2, %v3445_v47 }
  0x7b   : > { %2726 = vmatprep.mubr.msk.f32.mxu1 %vm362_vm2, %v3253_v9  ;;  %2842 = vmatprep.mubr.msk.f32.mxu0 %vm362_vm2, %v3448_v48  ;;  %v1139_v9 = vrot.slane %v290_v17, 1 }
  0x7e   : > { %2727 = vmatmul.mubr.msk.f32.vlgmr.msra.gmra.mrb[0].mxu1 %vm362_vm2, %v3255_v10  ;;  %2843 = vmatmul.mubr.msk.f32.gmra.mrb[8].mxu0 %vm362_vm2, %v3476_v62 }
  0x7f   : > { %2881 = vmatpush3.msk.msra.mxu1 %vm395_vm0, %v3217_v1  ;;  %2729 = vmatprep.mubr.msk.f32.mxu1 %vm362_vm2, %v3263_v15  ;;  %v1140_v1 = vsel %vm319_vm1, %v1137_v8, %v1139_v9 }
  0x80   : > { %2845 = vmatprep.mubr.msk.f32.mxu0 %vm362_vm2, %v3486_v31 }
  0x82   : > { %2730 = vmatmul.mubr.msk.f32.gmra.mrb[2].mxu1 %vm362_vm2, %v3265_v16  ;;  %2846 = vmatmul.mubr.msk.f32.gmra.mrb[10].mxu0 %vm362_vm2, %v3506_v46 }
  0x83   : > { %2732 = vmatprep.mubr.msk.f32.mxu1 %vm362_vm2, %v3293_v35  ;;  %2848 = vmatprep.mubr.msk.f32.mxu0 %vm362_vm2, %v1138_v36 }
  0x86   : > { %2733 = vmatmul.mubr.msk.f32.gmra.mrb[4].mxu1 %vm362_vm2, %v3300_v37  ;;  %2849 = vmatmul.mubr.msk.f32.gmra.mrb[12].mxu0 %vm362_vm2, %v1140_v1 }
  0x87   : > { %2735 = vmatprep.mubr.msk.f32.mxu1 %vm362_vm2, %v3303_v39  ;;  %2851 = vmatprep.mubr.msk.f32.mxu0 %vm362_vm2, %v3514_v40 }
  0x8a   : > { %2736 = vmatmul.mubr.msk.f32.gmra.mrb[6].mxu1 %vm362_vm2, %v3318_v44  ;;  %2852 = vmatmul.mubr.msk.f32.gmra.mrb[14].mxu0 %vm362_vm2, %v3530_v60 }
  0x8b   : > { %2738 = vmatprep.mubr.msk.f32.mxu1 %vm362_vm2, %v3357_v58  ;;  %2856 = vmatprep.mubr.msk.f32.mxu0 %vm362_vm2, %v3421_v33  ;;  %v3830_v58 = vld [vmem:[%s3988_s3] ss:$0 sm:$0xff] }
  0x8e   : > { %2739 = vmatmul.mubr.msk.f32.gmra.mrb[8].mxu1 %vm362_vm2, %v3359_v59  ;;  %2857 = vmatmul.mubr.msk.f32.vlgmr.msra.gmra.mrb[0].mxu0 %vm362_vm2, %v3433_v42 }
  0x8f   : > { %2741 = vmatprep.mubr.msk.f32.mxu1 %vm362_vm2, %v3377_v2  ;;  %2859 = vmatprep.mubr.msk.f32.mxu0 %vm362_vm2, %v3436_v43 }
  0x92   : > { %2742 = vmatmul.mubr.msk.f32.gmra.mrb[10].mxu1 %vm362_vm2, %v3379_v3  ;;  %2860 = vmatmul.mubr.msk.f32.gmra.mrb[2].mxu0 %vm362_vm2, %v3467_v57 }
  0x93   : > { %2744 = vmatprep.mubr.msk.f32.mxu1 %vm362_vm2, %v3413_v29  ;;  %2862 = vmatprep.mubr.msk.f32.mxu0 %vm362_vm2, %v3489_v45 }
  0x96   : > { %2745 = vmatmul.mubr.msk.f32.gmra.mrb[12].mxu1 %vm362_vm2, %v3415_v30  ;;  %2863 = vmatmul.mubr.msk.f32.gmra.mrb[4].mxu0 %vm362_vm2, %v3509_v50 }
  0x97   : > { %2747 = vmatprep.mubr.msk.f32.mxu1 %vm362_vm2, %v3546_v23  ;;  %2865 = vmatprep.mubr.msk.f32.mxu0 %vm362_vm2, %v3517_v55 }
  0x9a   : > { %2748 = vmatmul.mubr.msk.f32.gmra.mrb[14].mxu1 %vm362_vm2, %v3548_v51  ;;  %2866 = vmatmul.mubr.msk.f32.gmra.mrb[6].mxu0 %vm362_vm2, %v3540_v5 }
  0x9b   : > { %2764 = vmatprep.mubr.msk.f32.mxu1 %vm362_vm2, %v3411_v28  ;;  %2868 = vmatprep.mubr.msk.f32.mxu0 %vm362_vm2, %v3554_v26 }
  0x9e   : > { %2765 = vmatmul.mubr.msk.f32.vlgmr.msra.gmra.mrb[8].mxu1 %vm362_vm2, %v3445_v47  ;;  %2869 = vmatmul.mubr.msk.f32.gmra.mrb[8].mxu0 %vm362_vm2, %v3568_v12 }
  0x9f   : > { %2767 = vmatprep.mubr.msk.f32.mxu1 %vm362_vm2, %v3448_v48  ;;  %2871 = vmatprep.mubr.msk.f32.mxu0 %vm362_vm2, %v3576_v38 }
  0xa2   : > { %2768 = vmatmul.mubr.msk.f32.gmra.mrb[10].mxu1 %vm362_vm2, %v3476_v62  ;;  %2872 = vmatmul.mubr.msk.f32.gmra.mrb[10].mxu0 %vm362_vm2, %v3590_v32 }
  0xa3   : > { %2770 = vmatprep.mubr.msk.f32.mxu1 %vm362_vm2, %v3486_v31  ;;  %2874 = vmatprep.mubr.msk.f32.mxu0 %vm362_vm2, %v3595_v18 }
  0xa6   : > { %2771 = vmatmul.mubr.msk.f32.gmra.mrb[12].mxu1 %vm362_vm2, %v3506_v46  ;;  %2875 = vmatmul.mubr.msk.f32.gmra.mrb[12].mxu0 %vm362_vm2, %v3606_v21 }
  0xa7   : > { %2773 = vmatprep.mubr.msk.f32.mxu1 %vm362_vm2, %v1138_v36  ;;  %2877 = vmatprep.mubr.msk.f32.mxu0 %vm362_vm2, %v3520_v13 }
  0xaa   : > { %2774 = vmatmul.mubr.msk.f32.gmra.mrb[14].mxu1 %vm362_vm2, %v1140_v1  ;;  %2878 = vmatmul.mubr.msk.f32.gmra.mrb[14].mxu0 %vm362_vm2, %v3533_v0 }
 0x151   : > { %v2728_v10 = vpop.f32.mrb[0].mxu1 }
 0x152   : > { %v1040_v15 = vpop.f32.mrb[1].mxu1 }
 0x155   : > { %v2731_v16 = vpop.f32.mrb[2].mxu1 }
 0x156   : > { %v1050_v35 = vpop.f32.mrb[3].mxu1 }
 0x159   : > { %v2734_v37 = vpop.f32.mrb[4].mxu1 }
 0x15a   : > { %v1060_v39 = vpop.f32.mrb[5].mxu1 }
 0x15d   : > { %v2737_v44 = vpop.f32.mrb[6].mxu1 }
 0x15e   : > { %v1070_v49 = vpop.f32.mrb[7].mxu1 }
 0x161   : > { %v2858_v52 = vpop.f32.mrb[0].mxu0 }
 0x162   : > { %v2882_v13 = vadd.f32 %v2858_v52, %v2728_v10  ;;  %v1914_v56 = vpop.f32.mrb[1].mxu0 }
 0x163   : > { %v2883_v59 = vadd.f32 %v1914_v56, %v1040_v15 }
 0x164   : > { %v2017_v63 = vmul.f32 %v2882_v13, %v3825_v53 }
 0x165   : > { %v2016_v2 = vmul.f32 %v2883_v59, %v3825_v53  ;;  %v2861_v3 = vpop.f32.mrb[2].mxu0 }
 0x166   : > { %v3835_v4 = vadd.f32 %v3830_v58, %v2017_v63  ;;  %v2884_v19 = vadd.f32 %v2861_v3, %v2731_v16  ;;  %v1924_v28 = vpop.f32.mrb[3].mxu0 }
 0x167   : > { %v3838_v29 = vadd.f32 %v3830_v58, %v2016_v2  ;;  %v2885_v30 = vadd.f32 %v1924_v28, %v1050_v35 }
 0x168   : > { %v2452_v33 = vmul.f32 -1.442695, %v3835_v4  ;;  %v2019_v42 = vmul.f32 %v2884_v19, %v3825_v53 }
 0x169   : > { %v2451_v43 = vmul.f32 -1.442695, %v3838_v29  ;;  %v2018_v47 = vmul.f32 %v2885_v30, %v3825_v53  ;;  %v2864_v48 = vpop.f32.mrb[4].mxu0 }
 0x16a   : > { %3052 = vpow2.f32 %v2452_v33  ;;  %v3845_v57 = vadd.f32 %v3830_v58, %v2019_v42  ;;  %v2886_v62 = vadd.f32 %v2864_v48, %v2734_v37  ;;  %v1934_v11 = vpop.f32.mrb[5].mxu0 }
 0x16b   : > { %3054 = vpow2.f32 %v2451_v43  ;;  %v3848_v14 = vadd.f32 %v3830_v58, %v2018_v47  ;;  %v2887_v31 = vadd.f32 %v1934_v11, %v1060_v39 }
 0x16c   : > { %v2454_v45 = vmul.f32 -1.442695, %v3845_v57  ;;  %v2021_v46 = vmul.f32 %v2886_v62, %v3825_v53 }
 0x16d   : > { %v2453_v50 = vmul.f32 -1.442695, %v3848_v14  ;;  %v2020_v40 = vmul.f32 %v2887_v31, %v3825_v53  ;;  %v2867_v55 = vpop.f32.mrb[6].mxu0 }
 0x16e   : > { %3056 = vpow2.f32 %v2454_v45  ;;  %v3855_v60 = vadd.f32 %v3830_v58, %v2021_v46  ;;  %v2888_v0 = vadd.f32 %v2867_v55, %v2737_v44  ;;  %v1944_v5 = vpop.f32.mrb[7].mxu0 }
 0x16f   : > { %3058 = vpow2.f32 %v2453_v50  ;;  %v3858_v23 = vadd.f32 %v3830_v58, %v2020_v40  ;;  %v2889_v51 = vadd.f32 %v1944_v5, %v1070_v49 }
 0x170   : > { %v2456_v24 = vmul.f32 -1.442695, %v3855_v60  ;;  %v2023_v26 = vmul.f32 %v2888_v0, %v3825_v53 }
 0x171   : > { %v2455_v20 = vmul.f32 -1.442695, %v3858_v23  ;;  %v2022_v12 = vmul.f32 %v2889_v51, %v3825_v53  ;;  %v2766_v17 = vpop.f32.mrb[8].mxu1  ;;  %v2870_v38 = vpop.f32.mrb[8].mxu0 }
 0x172   : > { %3060 = vpow2.f32 %v2456_v24  ;;  %v3865_v32 = vadd.f32 %v3830_v58, %v2023_v26  ;;  %v2890_v54 = vadd.f32 %v2870_v38, %v2766_v17  ;;  %v1256_v18 = vpop.f32.mrb[9].mxu1  ;;  %v1954_v21 = vpop.f32.mrb[9].mxu0 }
 0x173   : > { %3062 = vpow2.f32 %v2455_v20  ;;  %v3868_v22 = vadd.f32 %v3830_v58, %v2022_v12  ;;  %v2891_v34 = vadd.f32 %v1954_v21, %v1256_v18 }
 0x174   : > { %v3053_v27 = vpop.eup %3052  ;;  %v2458_v25 = vmul.f32 -1.442695, %v3865_v32  ;;  %v2025_v61 = vmul.f32 %v2890_v54, %v3825_v53 }
 0x175   : > { %v3055_v41 = vpop.eup %3054  ;;  %v2104_v6 = vadd.f32 1.0, %v3053_v27  ;;  %v2457_v7 = vmul.f32 -1.442695, %v3868_v22  ;;  %v2024_v8 = vmul.f32 %v2891_v34, %v3825_v53  ;;  %v2769_v9 = vpop.f32.mrb[10].mxu1 }
 0x176   : > { %v2873_v36 = vpop.f32.mrb[10].mxu0  ;;  %v2103_v1 = vadd.f32 1.0, %v3055_v41  ;;  %3064 = vpow2.f32 %v2458_v25  ;;  %v3875_v10 = vadd.f32 %v3830_v58, %v2025_v61  ;;  %v1266_v16 = vpop.f32.mrb[11].mxu1 }
 0x177   : > { %v2892_v15 = vadd.f32 %v2873_v36, %v2769_v9  ;;  %v1964_v35 = vpop.f32.mrb[11].mxu0  ;;  %3066 = vrcp.f32 %v2104_v6  ;;  %v3878_v37 = vadd.f32 %v3830_v58, %v2024_v8 }
 0x178   : > { %v2893_v39 = vadd.f32 %v1964_v35, %v1266_v16  ;;  %v3057_v44 = vpop.eup %3056  ;;  %3068 = vrcp.f32 %v2103_v1  ;;  %v2460_v49 = vmul.f32 -1.442695, %v3875_v10 }
 0x179   : > { %v2027_v52 = vmul.f32 %v2892_v15, %v3825_v53  ;;  %v3059_v13 = vpop.eup %3058  ;;  %v2106_v56 = vadd.f32 1.0, %v3057_v44  ;;  %3070 = vpow2.f32 %v2457_v7  ;;  %v2459_v59 = vmul.f32 -1.442695, %v3878_v37  ;;  %v2772_v2 = vpop.f32.mrb[12].mxu1 }
 0x17a   : > { %v2026_v63 = vmul.f32 %v2893_v39, %v3825_v53  ;;  %v2876_v3 = vpop.f32.mrb[12].mxu0  ;;  %v2105_v19 = vadd.f32 1.0, %v3059_v13  ;;  %3072 = vpow2.f32 %v2460_v49  ;;  %v1276_v33 = vpop.f32.mrb[13].mxu1 }
 0x17b   : > { %v3887_v28 = vadd.f32 %v3830_v58, %v2027_v52  ;;  %v2894_v30 = vadd.f32 %v2876_v3, %v2772_v2  ;;  %v1974_v42 = vpop.f32.mrb[13].mxu0  ;;  %3074 = vrcp.f32 %v2106_v56 }
 0x17c   : > { %v3892_v43 = vadd.f32 %v3830_v58, %v2026_v63  ;;  %v2895_v47 = vadd.f32 %v1974_v42, %v1276_v33  ;;  %v3061_v48 = vpop.eup %3060  ;;  %3076 = vrcp.f32 %v2105_v19 }
 0x17d   : > { %v2462_v62 = vmul.f32 -1.442695, %v3887_v28  ;;  %v2029_v11 = vmul.f32 %v2894_v30, %v3825_v53  ;;  %v3063_v31 = vpop.eup %3062  ;;  %v2108_v45 = vadd.f32 1.0, %v3061_v48  ;;  %3078 = vpow2.f32 %v2459_v59  ;;  %v2775_v40 = vpop.f32.mrb[14].mxu1 }
 0x17e   : > { %v2461_v46 = vmul.f32 -1.442695, %v3892_v43  ;;  %v2028_v50 = vmul.f32 %v2895_v47, %v3825_v53  ;;  %v2879_v55 = vpop.f32.mrb[14].mxu0  ;;  %v2107_v0 = vadd.f32 1.0, %v3063_v31  ;;  %v1286_v24 = vpop.f32.mrb[15].mxu1 }
 0x17f   : > { %3080 = vpow2.f32 %v2462_v62  ;;  %v3900_v5 = vadd.f32 %v3830_v58, %v2029_v11  ;;  %v2896_v51 = vadd.f32 %v2879_v55, %v2775_v40  ;;  %v1984_v26 = vpop.f32.mrb[15].mxu0 }
 0x180   : > { %3082 = vrcp.f32 %v2108_v45  ;;  %v3903_v20 = vadd.f32 %v3830_v58, %v2028_v50  ;;  %v2897_v12 = vadd.f32 %v1984_v26, %v1286_v24  ;;  %v3065_v17 = vpop.eup %3064 }
 0x181   : > { %3084 = vrcp.f32 %v2107_v0  ;;  %v2464_v38 = vmul.f32 -1.442695, %v3900_v5  ;;  %v2031_v54 = vmul.f32 %v2896_v51, %v3825_v53  ;;  %v3067_v18 = vpop.eup %3066  ;;  %v2110_v21 = vadd.f32 1.0, %v3065_v17 }
 0x182   : > { %3086 = vpow2.f32 %v2461_v46  ;;  %v2463_v34 = vmul.f32 -1.442695, %v3903_v20  ;;  %v2030_v27 = vmul.f32 %v2897_v12, %v3825_v53  ;;  %v3069_v25 = vpop.eup %3068  ;;  %v2152_v61 = vmul.f32 %v3067_v18, %v3835_v4 }
 0x183   : > { %3088 = vpow2.f32 %v2464_v38  ;;  %v3916_v41 = vadd.f32 %v3830_v58, %v2031_v54  ;;  %v3071_v6 = vpop.eup %3070  ;;  %v2151_v7 = vmul.f32 %v3069_v25, %v3838_v29 }
 0x184   : > { %3090 = vrcp.f32 %v2110_v21  ;;  %v3920_v8 = vadd.f32 %v3830_v58, %v2030_v27  ;;  %v3073_v9 = vpop.eup %3072  ;;  %2169 = vst.msk [vmem:[%s3910_s10 + $0x8] sm:$0xff] %vm2167_vm4, %v2152_v61  ;;  %v2109_v36 = vadd.f32 1.0, %v3071_v6 }
 0x185   : > { %3092 = vpow2.f32 %v2463_v34  ;;  %v2466_v53 = vmul.f32 -1.442695, %v3916_v41  ;;  %v3075_v4 = vpop.eup %3074  ;;  %2168 = vst.msk [vmem:[%s3910_s10] sm:$0xff] %vm2167_vm4, %v2151_v7  ;;  %v2112_v1 = vadd.f32 1.0, %v3073_v9 }
 0x186   : > { %v2465_v15 = vmul.f32 -1.442695, %v3920_v8  ;;  %v3077_v29 = vpop.eup %3076  ;;  %v2154_v16 = vmul.f32 %v3075_v4, %v3845_v57  ;;  %3094 = vrcp.f32 %v2109_v36 }
 0x187   : > { %v3079_v58 = vpop.eup %3078  ;;  %v2153_v35 = vmul.f32 %v3077_v29, %v3848_v14  ;;  %3096 = vrcp.f32 %v2112_v1 }
 0x188   : > { %2171 = vst.msk [vmem:[%s3910_s10 + $0x18] sm:$0xff] %vm2167_vm4, %v2154_v16  ;;  %v2111_v44 = vadd.f32 1.0, %v3079_v58  ;;  %3098 = vpow2.f32 %v2466_v53 }
 0x189   : > { %v3081_v39 = vpop.eup %3080  ;;  %2170 = vst.msk [vmem:[%s3910_s10 + $0x10] sm:$0xff] %vm2167_vm4, %v2153_v35  ;;  %3100 = vpow2.f32 %v2465_v15 }
 0x18a   : > { %v3083_v49 = vpop.eup %3082  ;;  %v2114_v52 = vadd.f32 1.0, %v3081_v39  ;;  %3102 = vrcp.f32 %v2111_v44 }
 0x18b   : > { %v3085_v13 = vpop.eup %3084  ;;  %v2156_v57 = vmul.f32 %v3083_v49, %v3855_v60 }
 0x18c   : > { %v3087_v56 = vpop.eup %3086  ;;  %v2155_v14 = vmul.f32 %v3085_v13, %v3858_v23  ;;  %3104 = vrcp.f32 %v2114_v52 }
 0x18d   : > { %v3089_v59 = vpop.eup %3088  ;;  %2173 = vst.msk [vmem:[%s3910_s10 + $0x28] sm:$0xff] %vm2167_vm4, %v2156_v57  ;;  %v2113_v63 = vadd.f32 1.0, %v3087_v56 }
 0x18e   : > { %v3091_v2 = vpop.eup %3090  ;;  %2172 = vst.msk [vmem:[%s3910_s10 + $0x20] sm:$0xff] %vm2167_vm4, %v2155_v14  ;;  %v2116_v3 = vadd.f32 1.0, %v3089_v59 }
 0x18f   : > { %v3093_v19 = vpop.eup %3092  ;;  %v2158_v30 = vmul.f32 %v3091_v2, %v3865_v32  ;;  %3106 = vrcp.f32 %v2113_v63 }
 0x190   : > { %3108 = vrcp.f32 %v2116_v3  ;;  %v2115_v60 = vadd.f32 1.0, %v3093_v19  ;;  %v3095_v33 = vpop.eup %3094 }
 0x191   : > { %2175 = vst.msk [vmem:[%s3910_s10 + $0x38] sm:$0xff] %vm2167_vm4, %v2158_v30  ;;  %v3097_v23 = vpop.eup %3096  ;;  %v2157_v42 = vmul.f32 %v3095_v33, %v3868_v22 }
 0x192   : > { %3110 = vrcp.f32 %v2115_v60  ;;  %v3099_v47 = vpop.eup %3098  ;;  %v2160_v48 = vmul.f32 %v3097_v23, %v3875_v10 }
 0x193   : > { %v3101_v62 = vpop.eup %3100  ;;  %2174 = vst.msk [vmem:[%s3910_s10 + $0x30] sm:$0xff] %vm2167_vm4, %v2157_v42  ;;  %v2118_v11 = vadd.f32 1.0, %v3099_v47 }
 0x194   : > { %v3103_v32 = vpop.eup %3102  ;;  %2177 = vst.msk [vmem:[%s3910_s10 + $0x48] sm:$0xff] %vm2167_vm4, %v2160_v48  ;;  %v2117_v31 = vadd.f32 1.0, %v3101_v62 }
 0x195   : > { %v2159_v46 = vmul.f32 %v3103_v32, %v3878_v37  ;;  %3112 = vrcp.f32 %v2118_v11 }
 0x196   : > { %v3105_v45 = vpop.eup %3104  ;;  %3114 = vrcp.f32 %v2117_v31 }
 0x197   : > { %v2162_v22 = vmul.f32 %v3105_v45, %v3887_v28  ;;  %2176 = vst.msk [vmem:[%s3910_s10 + $0x40] sm:$0xff] %vm2167_vm4, %v2159_v46 }
 0x199   : > { %v3107_v10 = vpop.eup %3106  ;;  %2179 = vst.msk [vmem:[%s3910_s10 + $0x58] sm:$0xff] %vm2167_vm4, %v2162_v22 }
 0x19a   : > { %v3109_v50 = vpop.eup %3108  ;;  %v2161_v40 = vmul.f32 %v3107_v10, %v3892_v43 }
 0x19b   : > { %v2164_v55 = vmul.f32 %v3109_v50, %v3900_v5 }
 0x19c   : > { %v3111_v0 = vpop.eup %3110  ;;  %2178 = vst.msk [vmem:[%s3910_s10 + $0x50] sm:$0xff] %vm2167_vm4, %v2161_v40 }
 0x19d   : > { %2181 = vst.msk [vmem:[%s3910_s10 + $0x68] sm:$0xff] %vm2167_vm4, %v2164_v55  ;;  %v2163_v37 = vmul.f32 %v3111_v0, %v3903_v20 }
 0x19f   : > { %2180 = vst.msk [vmem:[%s3910_s10 + $0x60] sm:$0xff] %vm2167_vm4, %v2163_v37  ;;  %v3113_v28 = vpop.eup %3112 }
 0x1a0   : > { %v3115_v51 = vpop.eup %3114  ;;  %v2166_v24 = vmul.f32 %v3113_v28, %v3916_v41 }
 0x1a1   : > { %v2165_v26 = vmul.f32 %v3115_v51, %v3920_v8 }
 0x1a2   : > { %2183 = vst.msk [vmem:[%s3910_s10 + $0x78] sm:$0xff] %vm2167_vm4, %v2166_v24 }
 0x1a3   : > { %2182 = vst.msk [vmem:[%s3910_s10 + $0x70] sm:$0xff] %vm2167_vm4, %v2165_v26 }
 0x1a4 PF: > { %s14_s19 = sadd.s32 1, %s3154_s19   ;;  %s3994_s15 = smov %s3146_s17 }
 0x1a5   : > { %p11_p7 = scmp.ge.s32.totalorder %s14_s19, 6   ;;  %s3995_s16 = smov %s3150_s18 }
 0x1a6   : > { %s3996_s17 = smov %s3999_s20  ;;  %s3997_s18 = smov %s4003_s21 }
 0x1a7   :  { %13 = sbr.rel (!%p11_p7) target bundleno = 3 (0x3), region = 74 }

</bundles_post_ra>
